<compile_context>
chip_gen: v7x
topology: tpu7x:2x2x1
jax: 0.10.0
libtpu: 0.0.40
codegen_flags: <defaults>
</compile_context>

<pallas_src>
import functools

import jax
import jax.numpy as jnp
from jax.experimental import pallas as pl
from jax.experimental.pallas import tpu as pltpu


def _mask_update_kernel(x_ref, o_ref, *, alpha):
    x = x_ref[...].astype(jnp.float32)
    # y = relu(x) + 1e-6  > 0, so pow(y, a) == exp(a * log(y)) exactly in intent.
    y = jnp.maximum(x, 0.0) + 1e-6
    out = jnp.exp(jnp.float32(alpha) * jnp.log(y))
    o_ref[...] = out.astype(o_ref.dtype)


def mask_update(x, alpha=0.7):
    """x: (B, C, H, W) float array. Returns pow(relu(x)+1e-6, alpha)."""
    orig_shape = x.shape
    orig_dtype = x.dtype
    N = int(x.size)

    # Lane-dense layout: last dim is a big multiple of 128.
    L = 512
    rows = -(-N // L)                          # ceil(N / L)
    # Sublane tile: multiple of 8, capped at 1024 -> block <= (1024, 512) f32 = 2 MiB.
    tm = min(1024, max(8, ((rows + 7) // 8) * 8))
    rows_padded = -(-rows // tm) * tm          # pad rows to a multiple of tm
    padded_N = rows_padded * L

    x_flat = x.reshape(-1)
    if padded_N != N:
        # Zero padding is safe: relu(0)+1e-6 is positive, no NaN/Inf; tail is discarded.
        x_flat = jnp.pad(x_flat, (0, padded_N - N))
    x2 = x_flat.reshape(rows_padded, L)

    grid = (rows_padded // tm,)

    kernel = functools.partial(_mask_update_kernel, alpha=float(alpha))

    itemsize = jnp.dtype(orig_dtype).itemsize
    cost = pl.CostEstimate(
        flops=2 * N,
        transcendentals=2 * N,           # log + exp per element
        bytes_accessed=2 * N * itemsize,  # read + write
    )

    out2 = pl.pallas_call(
        kernel,
        out_shape=jax.ShapeDtypeStruct((rows_padded, L), orig_dtype),
        grid_spec=pltpu.PrefetchScalarGridSpec(
            num_scalar_prefetch=0,
            grid=grid,
            in_specs=[pl.BlockSpec((tm, L), lambda i: (i, 0))],
            out_specs=pl.BlockSpec((tm, L), lambda i: (i, 0)),
        ),
        compiler_params=pltpu.CompilerParams(
            dimension_semantics=("parallel",),
        ),
        cost_estimate=cost,
        input_output_aliases={0: 0},
    )(x2)

    return out2.reshape(-1)[:N].reshape(orig_shape)


def mask_update_ref(x, alpha=0.7):
    return jnp.power(jnp.maximum(x, 0.0) + 1e-6, alpha)


if __name__ == "__main__":
    key = jax.random.PRNGKey(0)
    B, C, H, W = 2, 4, 16, 16
    x = jax.random.normal(key, (B, C, H, W), dtype=jnp.float32)

    alpha = 0.7  # module stores this as a scalar parameter (clamp is commented out in the spec)

    out = mask_update(x, alpha)
    out = jax.block_until_ready(out)

    ref = mask_update_ref(x, alpha)
    assert out.shape == (B, C, H, W)
    assert jnp.allclose(out, ref, atol=1e-5, rtol=1e-5), "mismatch vs reference"

    print("KERNEL_OK")
</pallas_src>

<mosaic_0001>
module attributes {stable_mosaic.version = 11 : i64} {
  func.func @_mask_update_kernel(%arg0: i32, %arg1: memref<8x512xf32, #tpu.memory_space<vmem>>, %arg2: memref<8x512xf32, #tpu.memory_space<vmem>>) attributes {dimension_semantics = [#tpu.dimension_semantics<parallel>], iteration_bounds = array<i64: 1>, scalar_prefetch = 0 : i64, scratch_operands = 0 : i64, tpu.core_type = #tpu.core_type<tc>, window_params = [{transform_indices = @transform_0, window_bounds = array<i64: 8, 512>}, {transform_indices = @transform_1, window_bounds = array<i64: 8, 512>}]} {
    %c0 = arith.constant 0 : index
    %c0_0 = arith.constant 0 : index
    %0 = vector.load %arg1[%c0, %c0_0] : memref<8x512xf32, #tpu.memory_space<vmem>>, vector<8x512xf32>
    %cst = arith.constant 0.000000e+00 : f32
    %1 = vector.broadcast %cst : f32 to vector<8x512xf32>
    %2 = arith.maximumf %0, %1 : vector<8x512xf32>
    %cst_1 = arith.constant 9.99999997E-7 : f32
    %3 = vector.broadcast %cst_1 : f32 to vector<8x512xf32>
    %4 = arith.addf %2, %3 : vector<8x512xf32>
    %5 = math.log %4 : vector<8x512xf32>
    %cst_2 = arith.constant 0.699999988 : f32
    %6 = vector.broadcast %cst_2 : f32 to vector<8x512xf32>
    %7 = arith.mulf %6, %5 : vector<8x512xf32>
    %8 = math.exp %7 : vector<8x512xf32>
    %c0_3 = arith.constant 0 : index
    %c0_4 = arith.constant 0 : index
    %9 = vector.load %arg2[%c0_3, %c0_4] : memref<8x512xf32, #tpu.memory_space<vmem>>, vector<8x512xf32>
    tpu.vector_store %arg2[%c0_3, %c0_4], %8 {strides = array<i32>} : memref<8x512xf32, #tpu.memory_space<vmem>>, vector<8x512xf32>,
    return
  }
  func.func @transform_0(%arg0: i32) -> (i32, i32) {
    %c0_i32 = arith.constant 0 : i32
    %c0_i32_0 = arith.constant 0 : i32
    return %arg0, %c0_i32 : i32, i32
  }
  func.func @transform_1(%arg0: i32) -> (i32, i32) {
    %c0_i32 = arith.constant 0 : i32
    %c0_i32_0 = arith.constant 0 : i32
    return %arg0, %c0_i32 : i32, i32
  }
}

</mosaic_0001>

<bundles_post_ra>
// kernel: tpu_custom_call.1
= control target key start
LH: loop header
LB: loop body
LE: loop exit
PB: predicated region body
PF: predicated region fallthrough
CT: control target
= control target key end

     0   :  { %6 = vsyncpa [#allocation3], 0  ;;  %s174_s0 = inlined_call_operand.hbm [shape: f32[8,512], index: 0, kind: input, shape index: {}, may-alias: {0,1}]   ;;  %s175_s1 = inlined_call_operand.hbm [shape: f32[8,512], index: 1, kind: output, shape index: {}, may-alias: {0,1}]  }
   0x1   :  { %7 = vsyncpa [#allocation4], 0  ;;  %s138_s6 = smov [#allocation2]   ;;  %s90_s10 = scalar_lea.hbm %s174_s0, 512 }
   0x2   :  { %s14_s7 = sshll.u32 %s138_s6, 4  ;;  %p91_p0 = scmp.ne.s32.totalorder %s174_s0, %s90_s10  ;;  %s15_s7 = int_to_ptr.vmem [resolvable:$true] %s14_s7 }
   0x3   :  { %p94_p1 = scmp.lt.u32.totalorder %s90_s10, %s174_s0 }
   0x5   :  { %p96_p2 = pnand %p94_p1, %p91_p0 }
   0x7   :  { %99 = shalt.err (!%p96_p2)
}
   0x8   :  { %s100_s15 = scalar_lea.vmem %s15_s7, 512  ;;  %p105_p4 = scmp.lt.s32.totalorder %s15_s7, %s15_s7 }
   0x9   :  { %p101_p3 = scmp.ne.s32.totalorder %s15_s7, %s100_s15  ;;  %p106_p5 = scmp.lt.s32.totalorder %s100_s15, %s100_s15 }
   0xb   :  { %p107_p6 = por %p106_p5, %p105_p4 }
   0xd   :  { %p108_p7 = pnand %p107_p6, %p101_p3 }
   0xf   :  { %111 = shalt.err (!%p108_p7)
}
  0x10   :  { %17 = dma.hbm_to_vmem [thread:$0]  %s174_s0, 512, %s15_s7, [#allocation3]  }
  0x11   :  { %134 = dma.done.wait [#allocation3], 512  }
  0x12   :  { %135 = vsyncadd [#allocation3], 4294966784  ;;  %v21_v0 = vld [vmem:[#allocation2] sm:$0xff]  ;;  %v22_v1 = vld [vmem:[#allocation2 + $0x8] sm:$0xff]  ;;  %s139_s0 = smov [#allocation5]  }
  0x13   :  { %v23_v2 = vld [vmem:[#allocation2 + $0x10] sm:$0xff]  ;;  %v25_v3 = vmax.f32 %v21_v0, 0.0  ;;  %v26_v4 = vmax.f32 %v22_v1, 0.0  ;;  %v24_v6 = vld [vmem:[#allocation2 + $0x18] sm:$0xff]  ;;  %s63_s18 = sshll.u32 %s139_s0, 4  ;;  %s64_s18 = int_to_ptr.vmem [resolvable:$true] %s63_s18 }
  0x14   :  { %v27_v5 = vmax.f32 %v23_v2, 0.0  ;;  %v28_v7 = vmax.f32 %v24_v6, 0.0  ;;  %s112_s19 = scalar_lea.vmem %s64_s18, 512  ;;  %p117_p9 = scmp.lt.s32.totalorder %s64_s18, %s64_s18 }
  0x15   :  { %v29_v8 = vadd.f32 1e-06, %v25_v3  ;;  %v30_v9 = vadd.f32 1e-06, %v26_v4  ;;  %p113_p8 = scmp.ne.s32.totalorder %s64_s18, %s112_s19  ;;  %p118_p10 = scmp.lt.s32.totalorder %s112_s19, %s112_s19 }
  0x16   :  { %v31_v10 = vadd.f32 1e-06, %v27_v5  ;;  %v32_v11 = vadd.f32 1e-06, %v28_v7 }
  0x17   :  { %74 = vlog2.f32 %v29_v8  ;;  %p119_p11 = por %p118_p10, %p117_p9 }
  0x18   :  { %76 = vlog2.f32 %v30_v9 }
  0x19   :  { %78 = vlog2.f32 %v31_v10  ;;  %p120_p12 = pnand %p119_p11, %p113_p8 }
  0x1a   :  { %80 = vlog2.f32 %v32_v11 }
  0x21   :  { %v75_v12 = vpop.eup %74 }
  0x22   :  { %v77_v13 = vpop.eup %76  ;;  %v34_v14 = vmul.f32 0.6931472, %v75_v12 }
  0x23   :  { %v79_v15 = vpop.eup %78  ;;  %v36_v16 = vmul.f32 0.6931472, %v77_v13 }
  0x24   :  { %v81_v17 = vpop.eup %80  ;;  %v41_v18 = vmul.f32 0.7, %v34_v14  ;;  %v38_v19 = vmul.f32 0.6931472, %v79_v15 }
  0x25   :  { %v42_v20 = vmul.f32 0.7, %v36_v16  ;;  %v40_v21 = vmul.f32 0.6931472, %v81_v17 }
  0x26   :  { %v45_v22 = vmul.f32 1.442695, %v41_v18  ;;  %v43_v23 = vmul.f32 0.7, %v38_v19 }
  0x27   :  { %v47_v24 = vmul.f32 1.442695, %v42_v20  ;;  %v44_v25 = vmul.f32 0.7, %v40_v21 }
  0x28   :  { %82 = vpow2.f32 %v45_v22  ;;  %v49_v26 = vmul.f32 1.442695, %v43_v23 }
  0x29   :  { %84 = vpow2.f32 %v47_v24  ;;  %v51_v27 = vmul.f32 1.442695, %v44_v25 }
  0x2a   :  { %86 = vpow2.f32 %v49_v26 }
  0x2b   :  { %88 = vpow2.f32 %v51_v27 }
  0x32   :  { %v83_v28 = vpop.eup %82 }
  0x33   :  { %v85_v29 = vpop.eup %84  ;;  %53 = vst [vmem:[#allocation5] sm:$0xff] %v83_v28 }
  0x34   :  { %v87_v30 = vpop.eup %86  ;;  %54 = vst [vmem:[#allocation5 + $0x8] sm:$0xff] %v85_v29 }
  0x35   :  { %v89_v31 = vpop.eup %88  ;;  %55 = vst [vmem:[#allocation5 + $0x10] sm:$0xff] %v87_v30 }
  0x36   :  { %56 = vst [vmem:[#allocation5 + $0x18] sm:$0xff] %v89_v31 }
  0x37   :  { %123 = shalt.err (!%p120_p12)
}
  0x38   :  { %s124_s22 = scalar_lea.hbm %s175_s1, 512 }
  0x39   :  { %p125_p13 = scmp.ne.s32.totalorder %s175_s1, %s124_s22  ;;  %p128_p0 = scmp.lt.u32.totalorder %s124_s22, %s175_s1 }
  0x3b   :  { %p130_p1 = pnand %p128_p0, %p125_p13 }
  0x3d   :  { %133 = shalt.err (!%p130_p1)
}
  0x3e   :  { %66 = dma.vmem_to_hbm [thread:$0]  %s64_s18, 512, %s175_s1, [#allocation4]  }
  0x3f   :  { %136 = dma.done.wait [#allocation4], 512  }
  0x40   :  { %137 = vsyncadd [#allocation4], 4294966784 }
  0x41   :  { %70 = vsyncpa [#allocation3], 1 }
  0x42   :  { %71 = vsyncpa [#allocation4], 1 }

</bundles_post_ra>
